<compile_context>
chip_gen: v7x
topology: tpu7x:2x2x1
jax: 0.10.0
libtpu: 0.0.40
codegen_flags: <defaults>
</compile_context>

<pallas_src>
import functools

import jax
import jax.numpy as jnp
from jax.experimental import pallas as pl
from jax.experimental.pallas import tpu as pltpu

_NEG_INF = -1e30  # bias value for padded logit columns -> exp() underflows to 0


def _round_up(x, m):
    return ((x + m - 1) // m) * m


def actor_net_kernel(x_ref,
                     w1_ref, b1_ref,
                     w2_ref, b2_ref,
                     w3_ref, b3_ref,
                     w4_ref, b4_ref,
                     o_ref):
    # Compute dtype for MXU operands (bf16 x bf16 -> f32 accumulation).
    cdt = w1_ref.dtype

    # Layer 1: Linear + ReLU  (x is already bf16 at the call boundary)
    h = jnp.dot(x_ref[...].astype(cdt), w1_ref[...],
                preferred_element_type=jnp.float32)
    h = jnp.maximum(h + b1_ref[...], 0.0)

    # Layer 2: Linear + ReLU
    h = jnp.dot(h.astype(cdt), w2_ref[...],
                preferred_element_type=jnp.float32)
    h = jnp.maximum(h + b2_ref[...], 0.0)

    # Layer 3: Linear + ReLU
    h = jnp.dot(h.astype(cdt), w3_ref[...],
                preferred_element_type=jnp.float32)
    h = jnp.maximum(h + b3_ref[...], 0.0)

    # Layer 4: Linear + Softmax over the (lane-padded) feature axis.
    # Padded columns have a -1e30 bias, so exp() gives them exactly 0 and the
    # normalizer is unaffected.
    logits = jnp.dot(h.astype(cdt), w4_ref[...],
                     preferred_element_type=jnp.float32)
    logits = logits + b4_ref[...]
    m = jnp.max(logits, axis=-1, keepdims=True)
    e = jnp.exp(logits - m)
    denom = jnp.sum(e, axis=-1, keepdims=True)
    # Exact f32 divide (approx reciprocal gave ~1e-3 row-sum error; the kernel
    # is memory-bound so the exact divide is free).
    o_ref[...] = (e / denom).astype(o_ref.dtype)


@functools.partial(jax.jit, static_argnames=("output_dim", "tile_b"))
def actor_net_forward(x, params, *, output_dim, tile_b=None):
    """x: (B, input_dim) f32 (or bf16).  params: lane-padded dict from init_params.

    Weights are (in_p, out_p) bf16; biases are (1, out_p) f32.  Returns
    (B, output_dim) f32 softmax probabilities (torch Softmax(dim=1)).
    """
    B, in_dim = x.shape
    in_p = params["w1"].shape[0]
    hid_p = params["w1"].shape[1]
    out_p = params["w4"].shape[1]

    # Pad the feature axis of x to the lane-padded width and cast to bf16
    # (the kernel rounds to bf16 before the first dot anyway; bf16-in-HBM
    # halves the dominant read traffic in this memory-bound regime).
    if in_p != in_dim:
        x = jnp.pad(x, ((0, 0), (0, in_p - in_dim)))
    x = x.astype(params["w1"].dtype)

    # Batch tile: multiple of 8 sublanes, default 512 rows/step (measured
    # ~85% of HBM roofline at 512 vs ~63% at 256), capped so the grid has at
    # least 2 steps so v7x's 2 TensorCores both get work.
    if tile_b is None:
        tile_b = min(512, _round_up(B, 8))
        if B > 8:
            tile_b = min(tile_b, max(8, _round_up(-(-B // 2), 8)))
    tile_b = max(8, _round_up(int(tile_b), 8))

    padded_b = _round_up(B, tile_b)
    if padded_b != B:
        x = jnp.pad(x, ((0, padded_b - B), (0, 0)))

    grid = (padded_b // tile_b,)

    args = (x,
            params["w1"], params["b1"],
            params["w2"], params["b2"],
            params["w3"], params["b3"],
            params["w4"], params["b4"])

    # x / out: tiled along the batch grid axis (software-pipelined, lane-dense
    # last dim).  Params: constant index_map + single VMEM buffer - fetched
    # once, resident across all grid steps.
    x_spec = pl.BlockSpec((tile_b, in_p), lambda i: (i, 0))
    out_spec = pl.BlockSpec((tile_b, out_p), lambda i: (i, 0))
    param_specs = [
        pl.BlockSpec(a.shape, lambda i: (0, 0), pipeline_mode=pl.Buffered(1))
        for a in args[1:]
    ]

    # Explicit VMEM budget: resident params + double-buffered x/out tiles +
    # f32 intermediates, with headroom; clamped to [32 MiB, 64 MiB] so it is
    # safe on v7x (64 MiB physical) and generous on v5e/v6e (128 MiB).
    param_bytes = sum(int(a.size) * a.dtype.itemsize for a in args[1:])
    io_tile_bytes = tile_b * in_p * x.dtype.itemsize + tile_b * out_p * 4
    interm_bytes = 3 * tile_b * hid_p * 4
    vmem_limit = param_bytes + 2 * io_tile_bytes + interm_bytes
    vmem_limit = int(min(max(2 * vmem_limit + (8 << 20), 32 << 20), 64 << 20))

    # Advisory cost hint for XLA's scheduler.
    flops = 2 * padded_b * (in_p * hid_p + 2 * hid_p * hid_p + hid_p * out_p)
    bytes_accessed = (int(x.size) * x.dtype.itemsize
                      + param_bytes
                      + padded_b * out_p * 4)
    cost = pl.CostEstimate(flops=flops,
                           transcendentals=padded_b * out_p,
                           bytes_accessed=bytes_accessed)

    out = pl.pallas_call(
        actor_net_kernel,
        out_shape=jax.ShapeDtypeStruct((padded_b, out_p), jnp.float32),
        grid=grid,
        in_specs=[x_spec] + param_specs,
        out_specs=out_spec,
        compiler_params=pltpu.CompilerParams(
            dimension_semantics=("parallel",),
            vmem_limit_bytes=vmem_limit),
        cost_estimate=cost,
    )(*args)

    # Slice off batch padding and the padded logit columns.
    return out[:B, :output_dim]


def init_params(key, input_dim, hidden_dim, output_dim,
                weight_dtype=jnp.bfloat16):
    """Init mirroring torch.nn.Linear default (U[-1/sqrt(fan_in), 1/sqrt(fan_in)]).

    Weights stored as (in_features, out_features), zero-padded to multiples of
    128 on both axes (lane-dense vregs / full-width MXU), in bf16.  Biases are
    (1, out_p) f32; the final layer's padded bias columns are -1e30 so the
    softmax assigns them exactly 0 probability.
    """
    in_p = _round_up(input_dim, 128)
    hid_p = _round_up(hidden_dim, 128)
    out_p = _round_up(output_dim, 128)

    dims = [(input_dim, hidden_dim, in_p, hid_p),
            (hidden_dim, hidden_dim, hid_p, hid_p),
            (hidden_dim, hidden_dim, hid_p, hid_p),
            (hidden_dim, output_dim, hid_p, out_p)]

    params = {}
    keys = jax.random.split(key, 2 * len(dims))
    for i, (fan_in, fan_out, fan_in_p, fan_out_p) in enumerate(dims):
        bound = float(fan_in) ** -0.5
        w = jax.random.uniform(keys[2 * i], (fan_in, fan_out),
                               minval=-bound, maxval=bound, dtype=jnp.float32)
        b = jax.random.uniform(keys[2 * i + 1], (1, fan_out),
                               minval=-bound, maxval=bound, dtype=jnp.float32)
        w = jnp.pad(w, ((0, fan_in_p - fan_in), (0, fan_out_p - fan_out)))
        if i == len(dims) - 1:
            b = jnp.pad(b, ((0, 0), (0, fan_out_p - fan_out)),
                        constant_values=_NEG_INF)
        else:
            b = jnp.pad(b, ((0, 0), (0, fan_out_p - fan_out)))
        params[f"w{i + 1}"] = w.astype(weight_dtype)
        params[f"b{i + 1}"] = b  # f32
    return params


def reference_forward(x, params, *, output_dim):
    """Pure-JAX reference with the same numerics as the kernel (bf16 MXU
    operands, f32 accumulation / elementwise math, padded softmax columns)."""
    cdt = params["w1"].dtype
    in_p = params["w1"].shape[0]
    xb = jnp.pad(x, ((0, 0), (0, in_p - x.shape[1]))).astype(cdt)

    def lin(h, w, b):
        return jnp.dot(h.astype(cdt), w,
                       preferred_element_type=jnp.float32) + b

    h = jnp.maximum(lin(xb, params["w1"], params["b1"]), 0.0)
    h = jnp.maximum(lin(h, params["w2"], params["b2"]), 0.0)
    h = jnp.maximum(lin(h, params["w3"], params["b3"]), 0.0)
    logits = lin(h, params["w4"], params["b4"])
    probs = jax.nn.softmax(logits, axis=-1)
    return probs[:, :output_dim]


if __name__ == "__main__":
    key = jax.random.PRNGKey(0)
    k_x, k_p = jax.random.split(key)

    batch = 20          # not a multiple of the tile -> exercises padding path
    input_dim = 16
    hidden_dim = 32
    output_dim = 8

    x = jax.random.normal(k_x, (batch, input_dim), dtype=jnp.float32)
    params = init_params(k_p, input_dim, hidden_dim, output_dim)

    out = actor_net_forward(x, params, output_dim=output_dim)
    out = jax.block_until_ready(out)

    assert out.shape == (batch, output_dim), out.shape

    # Softmax rows sum to 1 (exact divide -> f32 precision).
    row_sums = jnp.sum(out, axis=1)
    assert bool(jnp.all(jnp.abs(row_sums - 1.0) < 1e-4)), row_sums

    # Matches a pure-JAX reference with the same (bf16-operand) numerics.
    ref = reference_forward(x, params, output_dim=output_dim)
    err = jnp.max(jnp.abs(out - ref))
    assert bool(err < 1e-3), err

    print("KERNEL_OK")
</pallas_src>

<mosaic_0001>
module attributes {stable_mosaic.version = 11 : i64} {
  func.func @actor_net_kernel(%arg0: i32, %arg1: memref<16x128xbf16, #tpu.memory_space<vmem>>, %arg2: memref<128x128xbf16, #tpu.memory_space<vmem>>, %arg3: memref<1x128xf32, #tpu.memory_space<vmem>>, %arg4: memref<128x128xbf16, #tpu.memory_space<vmem>>, %arg5: memref<1x128xf32, #tpu.memory_space<vmem>>, %arg6: memref<128x128xbf16, #tpu.memory_space<vmem>>, %arg7: memref<1x128xf32, #tpu.memory_space<vmem>>, %arg8: memref<128x128xbf16, #tpu.memory_space<vmem>>, %arg9: memref<1x128xf32, #tpu.memory_space<vmem>>, %arg10: memref<16x128xf32, #tpu.memory_space<vmem>>) attributes {dimension_semantics = [#tpu.dimension_semantics<parallel>], iteration_bounds = array<i64: 2>, scalar_prefetch = 0 : i64, scratch_operands = 0 : i64, tpu.core_type = #tpu.core_type<tc>, window_params = [{transform_indices = @transform_0, window_bounds = array<i64: 16, 128>}, {pipeline_mode = #tpu.pipeline_mode<synchronous>, transform_indices = @transform_1, window_bounds = array<i64: 128, 128>}, {pipeline_mode = #tpu.pipeline_mode<synchronous>, transform_indices = @transform_2, window_bounds = array<i64: 1, 128>}, {pipeline_mode = #tpu.pipeline_mode<synchronous>, transform_indices = @transform_3, window_bounds = array<i64: 128, 128>}, {pipeline_mode = #tpu.pipeline_mode<synchronous>, transform_indices = @transform_4, window_bounds = array<i64: 1, 128>}, {pipeline_mode = #tpu.pipeline_mode<synchronous>, transform_indices = @transform_5, window_bounds = array<i64: 128, 128>}, {pipeline_mode = #tpu.pipeline_mode<synchronous>, transform_indices = @transform_6, window_bounds = array<i64: 1, 128>}, {pipeline_mode = #tpu.pipeline_mode<synchronous>, transform_indices = @transform_7, window_bounds = array<i64: 128, 128>}, {pipeline_mode = #tpu.pipeline_mode<synchronous>, transform_indices = @transform_8, window_bounds = array<i64: 1, 128>}, {transform_indices = @transform_9, window_bounds = array<i64: 16, 128>}]} {
    %c0 = arith.constant 0 : index
    %c0_0 = arith.constant 0 : index
    %0 = vector.load %arg1[%c0, %c0_0] : memref<16x128xbf16, #tpu.memory_space<vmem>>, vector<16x128xbf16>
    %c0_1 = arith.constant 0 : index
    %c0_2 = arith.constant 0 : index
    %1 = vector.load %arg2[%c0_1, %c0_2] : memref<128x128xbf16, #tpu.memory_space<vmem>>, vector<128x128xbf16>
    %cst = arith.constant dense<0.000000e+00> : vector<16x128xf32>
    %2 = tpu.matmul %0, %1, %cst {dimension_numbers = #tpu.dot_dimension_numbers<[1], [0], [0], [1], [0, 0, 1, 1], [], []>} : vector<16x128xbf16>, vector<128x128xbf16>, vector<16x128xf32> -> vector<16x128xf32>
    %c0_3 = arith.constant 0 : index
    %c0_4 = arith.constant 0 : index
    %3 = vector.load %arg3[%c0_3, %c0_4] : memref<1x128xf32, #tpu.memory_space<vmem>>, vector<1x128xf32>
    %4 = vector.broadcast %3 : vector<1x128xf32> to vector<16x128xf32>
    %5 = arith.addf %2, %4 : vector<16x128xf32>
    %cst_5 = arith.constant 0.000000e+00 : f32
    %6 = vector.broadcast %cst_5 : f32 to vector<16x128xf32>
    %7 = arith.maximumf %5, %6 : vector<16x128xf32>
    %8 = arith.truncf %7 : vector<16x128xf32> to vector<16x128xbf16>
    %c0_6 = arith.constant 0 : index
    %c0_7 = arith.constant 0 : index
    %9 = vector.load %arg4[%c0_6, %c0_7] : memref<128x128xbf16, #tpu.memory_space<vmem>>, vector<128x128xbf16>
    %cst_8 = arith.constant dense<0.000000e+00> : vector<16x128xf32>
    %10 = tpu.matmul %8, %9, %cst_8 {dimension_numbers = #tpu.dot_dimension_numbers<[1], [0], [0], [1], [0, 0, 1, 1], [], []>} : vector<16x128xbf16>, vector<128x128xbf16>, vector<16x128xf32> -> vector<16x128xf32>
    %c0_9 = arith.constant 0 : index
    %c0_10 = arith.constant 0 : index
    %11 = vector.load %arg5[%c0_9, %c0_10] : memref<1x128xf32, #tpu.memory_space<vmem>>, vector<1x128xf32>
    %12 = vector.broadcast %11 : vector<1x128xf32> to vector<16x128xf32>
    %13 = arith.addf %10, %12 : vector<16x128xf32>
    %cst_11 = arith.constant 0.000000e+00 : f32
    %14 = vector.broadcast %cst_11 : f32 to vector<16x128xf32>
    %15 = arith.maximumf %13, %14 : vector<16x128xf32>
    %16 = arith.truncf %15 : vector<16x128xf32> to vector<16x128xbf16>
    %c0_12 = arith.constant 0 : index
    %c0_13 = arith.constant 0 : index
    %17 = vector.load %arg6[%c0_12, %c0_13] : memref<128x128xbf16, #tpu.memory_space<vmem>>, vector<128x128xbf16>
    %cst_14 = arith.constant dense<0.000000e+00> : vector<16x128xf32>
    %18 = tpu.matmul %16, %17, %cst_14 {dimension_numbers = #tpu.dot_dimension_numbers<[1], [0], [0], [1], [0, 0, 1, 1], [], []>} : vector<16x128xbf16>, vector<128x128xbf16>, vector<16x128xf32> -> vector<16x128xf32>
    %c0_15 = arith.constant 0 : index
    %c0_16 = arith.constant 0 : index
    %19 = vector.load %arg7[%c0_15, %c0_16] : memref<1x128xf32, #tpu.memory_space<vmem>>, vector<1x128xf32>
    %20 = vector.broadcast %19 : vector<1x128xf32> to vector<16x128xf32>
    %21 = arith.addf %18, %20 : vector<16x128xf32>
    %cst_17 = arith.constant 0.000000e+00 : f32
    %22 = vector.broadcast %cst_17 : f32 to vector<16x128xf32>
    %23 = arith.maximumf %21, %22 : vector<16x128xf32>
    %24 = arith.truncf %23 : vector<16x128xf32> to vector<16x128xbf16>
    %c0_18 = arith.constant 0 : index
    %c0_19 = arith.constant 0 : index
    %25 = vector.load %arg8[%c0_18, %c0_19] : memref<128x128xbf16, #tpu.memory_space<vmem>>, vector<128x128xbf16>
    %cst_20 = arith.constant dense<0.000000e+00> : vector<16x128xf32>
    %26 = tpu.matmul %24, %25, %cst_20 {dimension_numbers = #tpu.dot_dimension_numbers<[1], [0], [0], [1], [0, 0, 1, 1], [], []>} : vector<16x128xbf16>, vector<128x128xbf16>, vector<16x128xf32> -> vector<16x128xf32>
    %c0_21 = arith.constant 0 : index
    %c0_22 = arith.constant 0 : index
    %27 = vector.load %arg9[%c0_21, %c0_22] : memref<1x128xf32, #tpu.memory_space<vmem>>, vector<1x128xf32>
    %28 = vector.broadcast %27 : vector<1x128xf32> to vector<16x128xf32>
    %29 = arith.addf %26, %28 : vector<16x128xf32>
    %cst_23 = arith.constant dense<0xFF800000> : vector<16xf32>
    %30 = vector.multi_reduction <maximumf>, %29, %cst_23 [1] : vector<16x128xf32> to vector<16xf32>
    %31 = vector.shape_cast %30 : vector<16xf32> to vector<16x1xf32>
    %32 = vector.broadcast %31 : vector<16x1xf32> to vector<16x128xf32>
    %33 = arith.subf %29, %32 : vector<16x128xf32>
    %34 = math.exp %33 : vector<16x128xf32>
    %cst_24 = arith.constant dense<0.000000e+00> : vector<16xf32>
    %35 = vector.multi_reduction <add>, %34, %cst_24 [1] : vector<16x128xf32> to vector<16xf32>
    %36 = vector.shape_cast %35 : vector<16xf32> to vector<16x1xf32>
    %37 = vector.broadcast %36 : vector<16x1xf32> to vector<16x128xf32>
    %38 = arith.divf %34, %37 : vector<16x128xf32>
    %c0_25 = arith.constant 0 : index
    %c0_26 = arith.constant 0 : index
    %39 = vector.load %arg10[%c0_25, %c0_26] : memref<16x128xf32, #tpu.memory_space<vmem>>, vector<16x128xf32>
    tpu.vector_store %arg10[%c0_25, %c0_26], %38 {strides = array<i32>} : memref<16x128xf32, #tpu.memory_space<vmem>>, vector<16x128xf32>,
    return
  }
  func.func @transform_0(%arg0: i32) -> (i32, i32) {
    %c0_i32 = arith.constant 0 : i32
    %c0_i32_0 = arith.constant 0 : i32
    return %arg0, %c0_i32 : i32, i32
  }
  func.func @transform_1(%arg0: i32) -> (i32, i32) {
    %c0_i32 = arith.constant 0 : i32
    %c0_i32_0 = arith.constant 0 : i32
    %c0_i32_1 = arith.constant 0 : i32
    return %c0_i32, %c0_i32_0 : i32, i32
  }
  func.func @transform_2(%arg0: i32) -> (i32, i32) {
    %c0_i32 = arith.constant 0 : i32
    %c0_i32_0 = arith.constant 0 : i32
    %c0_i32_1 = arith.constant 0 : i32
    return %c0_i32, %c0_i32_0 : i32, i32
  }
  func.func @transform_3(%arg0: i32) -> (i32, i32) {
    %c0_i32 = arith.constant 0 : i32
    %c0_i32_0 = arith.constant 0 : i32
    %c0_i32_1 = arith.constant 0 : i32
    return %c0_i32, %c0_i32_0 : i32, i32
  }
  func.func @transform_4(%arg0: i32) -> (i32, i32) {
    %c0_i32 = arith.constant 0 : i32
    %c0_i32_0 = arith.constant 0 : i32
    %c0_i32_1 = arith.constant 0 : i32
    return %c0_i32, %c0_i32_0 : i32, i32
  }
  func.func @transform_5(%arg0: i32) -> (i32, i32) {
    %c0_i32 = arith.constant 0 : i32
    %c0_i32_0 = arith.constant 0 : i32
    %c0_i32_1 = arith.constant 0 : i32
    return %c0_i32, %c0_i32_0 : i32, i32
  }
  func.func @transform_6(%arg0: i32) -> (i32, i32) {
    %c0_i32 = arith.constant 0 : i32
    %c0_i32_0 = arith.constant 0 : i32
    %c0_i32_1 = arith.constant 0 : i32
    return %c0_i32, %c0_i32_0 : i32, i32
  }
  func.func @transform_7(%arg0: i32) -> (i32, i32) {
    %c0_i32 = arith.constant 0 : i32
    %c0_i32_0 = arith.constant 0 : i32
    %c0_i32_1 = arith.constant 0 : i32
    return %c0_i32, %c0_i32_0 : i32, i32
  }
  func.func @transform_8(%arg0: i32) -> (i32, i32) {
    %c0_i32 = arith.constant 0 : i32
    %c0_i32_0 = arith.constant 0 : i32
    %c0_i32_1 = arith.constant 0 : i32
    return %c0_i32, %c0_i32_0 : i32, i32
  }
  func.func @transform_9(%arg0: i32) -> (i32, i32) {
    %c0_i32 = arith.constant 0 : i32
    %c0_i32_0 = arith.constant 0 : i32
    return %arg0, %c0_i32 : i32, i32
  }
}

</mosaic_0001>

<bundles_post_ra>
// kernel: actor_net_forward.1
= control target key start
LH: loop header
LB: loop body
LE: loop exit
PB: predicated region body
PF: predicated region fallthrough
CT: control target
= control target key end

     0   :  { %14 = vsyncpa [#allocation3], 0  ;;  %s1577_s0 = inlined_call_operand.vmem [shape: bf16[32,128], index: 0, kind: input, shape index: {}]   ;;  %s1578_s1 = inlined_call_operand.vmem [shape: bf16[128,128], index: 1, kind: input, shape index: {}]   ;;  %s1579_s2 = inlined_call_operand.vmem [shape: f32[1,128], index: 2, kind: input, shape index: {}]   ;;  %s1580_s3 = inlined_call_operand.hbm [shape: bf16[128,128], index: 3, kind: input, shape index: {}]   ;;  %s1581_s4 = inlined_call_operand.vmem [shape: f32[1,128], index: 4, kind: input, shape index: {}]   ;;  %s1582_s5 = inlined_call_operand.hbm [shape: bf16[128,128], index: 5, kind: input, shape index: {}]   ;;  %s1583_s6 = inlined_call_operand.vmem [shape: f32[1,128], index: 6, kind: input, shape index: {}]   ;;  %s1584_s7 = inlined_call_operand.hbm [shape: bf16[128,128], index: 7, kind: input, shape index: {}]   ;;  %s1585_s8 = inlined_call_operand.vmem [shape: f32[1,128], index: 8, kind: input, shape index: {}]   ;;  %s1586_s9 = inlined_call_operand.vmem [shape: f32[32,128], index: 9, kind: output, shape index: {}]  }
   0x1   :  { %15 = vsyncpa [#allocation5], 0  ;;  %s1364_s30 = smov 0  }
   0x2 LB: > { %s953_s10 = sadd.s32 4294967295, %s1305_s30   ;;  %p955_p0 = scmp.ge.s32.totalorder %s1305_s30, 1  ;;  %s1305_s30 = sphi %s1364_s30, %s21_s30  }
   0x3   : > { %p246_p1 = scmp.lt.s32.totalorder %s1305_s30, 3  ;;  %p1374_p2 = scmp.eq.s32.totalorder %s953_s10, 0 }
   0x4   : > { %s1307_s13 = smov [#allocation4]   ;;  %s1308_s15 = smov [#allocation2]  }
   0x5   : > { %s1590_s11 = scalar_select %p1374_p2, 1, 0 }
   0x6   : > { %p1378_p3 = pnand %p955_p0, %p246_p1  ;;  %s280_s14 = sshll.u32 %s1307_s13, 4  ;;  %s281_s14 = int_to_ptr.vmem [resolvable:$true] %s280_s14 }
   0x7   : > { %s264_s16 = sshll.u32 %s1308_s15, 4  ;;  %s1309_s18 = smov [#allocation6]   ;;  %s1390_s16 = int_to_ptr.vmem [resolvable:$true] %s264_s16 }
   0x8   : > { %s1591_s12 = scalar_select %p1378_p3, 1, 0 }
   0x9   : > { %p1135_p4 = pneg %p1378_p3  ;;  %s296_s19 = sshll.u32 %s1309_s18, 4  ;;  %s1392_s19 = int_to_ptr.vmem [resolvable:$true] %s296_s19 }
   0xa   : > { %s1207_s22 = scalar_lea.hbm %s1582_s5, 1024 }
   0xb   : > { %p1386_p5 = pnand %p1374_p2, %p1135_p4  ;;  %p1208_p6 = scmp.ne.s32.totalorder %s1582_s5, %s1207_s22 }
   0xc   : > { %p1214_p10 = scmp.lt.u32.totalorder %s1207_s22, %s1582_s5 }
   0xd   : > { %p1402_p7 = pneg %p1386_p5 }
   0xf   : > { %p1210_p8 = pnand %p1402_p7, %p1208_p6 }
  0x11   : > { %p1211_p9 = pneg %p1210_p8 }
  0x13   : > { %p1216_p11 = pnand %p1214_p10, %p1211_p9 }
  0x15   : > { %1219 = shalt.err (!%p1216_p11)
}
  0x16   : > { %s1220_s28 = scalar_lea.vmem %s281_s14, 1024  ;;  %p1228_p1 = scmp.lt.s32.totalorder %s281_s14, %s281_s14 }
  0x17   : > { %p1221_p12 = scmp.ne.s32.totalorder %s281_s14, %s1220_s28  ;;  %p1229_p4 = scmp.lt.s32.totalorder %s1220_s28, %s1220_s28 }
  0x19   : > { %p1223_p13 = pnand %p1221_p12, %p1402_p7  ;;  %p1230_p2 = por %p1229_p4, %p1228_p1 }
  0x1b   : > { %p1224_p0 = pneg %p1223_p13 }
  0x1d   : > { %p1231_p3 = pnand %p1230_p2, %p1224_p0 }
  0x1f   : > { %1234 = shalt.err (!%p1231_p3)
}
  0x20   : > { %s1310_s29 = smov 64   ;;  %s1311_s13 = smov 4  }
  0x21   : > { %1141 = dma.hbm_to_vmem [thread:$0]  (!%p1386_p5), %s1582_s5, 1024, %s281_s14, [#allocation5], %s1310_s29, %s1310_s29, %s1311_s13  }
  0x22   : > { %s1235_s22 = scalar_lea.hbm %s1580_s3, 1024 }
  0x23   : > { %p1236_p2 = scmp.ne.s32.totalorder %s1580_s3, %s1235_s22  ;;  %p1242_p8 = scmp.lt.u32.totalorder %s1235_s22, %s1580_s3 }
  0x25   : > { %p1238_p3 = pnand %p1236_p2, %p1402_p7 }
  0x27   : > { %p1239_p6 = pneg %p1238_p3 }
  0x29   : > { %p1244_p9 = pnand %p1242_p8, %p1239_p6 }
  0x2b   : > { %1247 = shalt.err (!%p1244_p9)
}
  0x2c   : > { %s1248_s14 = scalar_lea.vmem %s1390_s16, 1024  ;;  %p1256_p13 = scmp.lt.s32.totalorder %s1390_s16, %s1390_s16 }
  0x2d   : > { %p1249_p10 = scmp.ne.s32.totalorder %s1390_s16, %s1248_s14  ;;  %p1257_p0 = scmp.lt.s32.totalorder %s1248_s14, %s1248_s14 }
  0x2f   : > { %p1251_p11 = pnand %p1249_p10, %p1402_p7  ;;  %p1258_p1 = por %p1257_p0, %p1256_p13 }
  0x31   : > { %p1252_p12 = pneg %p1251_p11 }
  0x33   : > { %p1259_p4 = pnand %p1258_p1, %p1252_p12 }
  0x35   : > { %1262 = shalt.err (!%p1259_p4)
}
  0x36   : > { %1138 = dma.hbm_to_vmem [thread:$0]  (!%p1386_p5), %s1580_s3, 1024, %s1390_s16, [#allocation3], %s1310_s29, %s1310_s29, %s1311_s13  }
  0x37   : > { %s1263_s21 = scalar_lea.hbm %s1584_s7, 1024 }
  0x38   : > { %p1264_p2 = scmp.ne.s32.totalorder %s1584_s7, %s1263_s21  ;;  %p1270_p8 = scmp.lt.u32.totalorder %s1263_s21, %s1584_s7 }
  0x3a   : > { %p1266_p3 = pnand %p1264_p2, %p1402_p7 }
  0x3c   : > { %p1267_p6 = pneg %p1266_p3 }
  0x3e   : > { %p1272_p9 = pnand %p1270_p8, %p1267_p6 }
  0x40   : > { %1275 = shalt.err (!%p1272_p9)
}
  0x41   : > { %s1276_s16 = scalar_lea.vmem %s1392_s19, 1024  ;;  %p1284_p13 = scmp.lt.s32.totalorder %s1392_s19, %s1392_s19 }
  0x42   : > { %p1277_p10 = scmp.ne.s32.totalorder %s1392_s19, %s1276_s16  ;;  %p1285_p0 = scmp.lt.s32.totalorder %s1276_s16, %s1276_s16 }
  0x44   : > { %p1279_p11 = pnand %p1277_p10, %p1402_p7  ;;  %p1286_p1 = por %p1285_p0, %p1284_p13 }
  0x46   : > { %p1280_p12 = pneg %p1279_p11 }
  0x48   : > { %p1287_p4 = pnand %p1286_p1, %p1280_p12 }
  0x4a   : > { %1290 = shalt.err (!%p1287_p4)
}
  0x4b   : > { %1144 = dma.hbm_to_vmem [thread:$0]  (!%p1386_p5), %s1584_s7, 1024, %s1392_s19, [#allocation5], %s1310_s29, %s1310_s29, %s1311_s13  }
  0x4c   : > { %p1594_p2 = scmp.ne.s32.totalorder %s1591_s12, 0 }
  0x4d   : > { %p1595_p7 = scmp.ne.s32.totalorder (!%p1594_p2), %s1590_s11, 0 }
  0x4e   : > { %324 = sbr.rel (%p1594_p2) target bundleno = 1313 (0x521), region = 56 }
  0x55   : > { %1296 = dma.done.wait (%p1595_p7), [#allocation3], 1024  }
  0x56   : > { %1298 = vsyncadd (%p1595_p7), [#allocation3], 4294966272 }
  0x57   : > { %1300 = dma.done.wait (%p1595_p7), [#allocation5], 2048  }
  0x58   : > { %1302 = vsyncadd (%p1595_p7), [#allocation5], 4294965248  ;;  %s964_s17 = sshll.u32 %s953_s10, 1  ;;  %v1312_v0 = vmov 0.0   ;;  %vm1313_vm0 = vmmov 0   ;;  %v1166_v1 = vld [vmem:[%s1578_s1] sm:$0xff]  }
  0x59   : > { %1043 = vmatprep.subr.bf16.mxu0 %v1312_v0  ;;  %1059 = vmatprep.mubr.msk.bf16.mxu0 %vm1313_vm0, %v1312_v0  ;;  %p369_p5 = scmp.lt.s32.totalorder %s964_s17, 3  ;;  %v1167_v2 = vld [vmem:[%s1578_s1 + $0x8] sm:$0xff]   ;;  %v1168_v3 = vld [vmem:[%s1578_s1 + $0x10] sm:$0xff]   ;;  %v1175_v4 = vld [vmem:[#allocation2] sm:$0xff]  }
  0x5a   : > { %1063 = vmatprep.subr.bf16.mxu1 %v1312_v0  ;;  %1079 = vmatprep.mubr.msk.bf16.mxu1 %vm1313_vm0, %v1312_v0  ;;  %v1169_v5 = vld [vmem:[%s1578_s1 + $0x18] sm:$0xff]   ;;  %v1176_v6 = vld [vmem:[#allocation2 + $0x8] sm:$0xff]   ;;  %v1170_v7 = vld [vmem:[%s1578_s1 + $0x20] sm:$0xff]  }
  0x5b   : > { %s1597_s17 = smov (!%p369_p5, %s964_s17), 3  ;;  %1044 = vmatpush3.bf16.msra.mxu0 %v1166_v1  ;;  %1064 = vmatpush3.bf16.msra.mxu1 %v1175_v4  ;;  %v1177_v8 = vld [vmem:[#allocation2 + $0x10] sm:$0xff]   ;;  %v1171_v9 = vld [vmem:[%s1578_s1 + $0x28] sm:$0xff]   ;;  %v1178_v10 = vld [vmem:[#allocation2 + $0x18] sm:$0xff]  }
  0x5c   : > { %1045 = vmatprep.subr.bf16.mxu0 %v1312_v0  ;;  %s965_s25 = sshll.u32 %s1597_s17, 2  ;;  %1065 = vmatprep.subr.bf16.mxu1 %v1312_v0  ;;  %v1172_v11 = vld [vmem:[%s1578_s1 + $0x30] sm:$0xff]   ;;  %v1179_v12 = vld [vmem:[#allocation2 + $0x20] sm:$0xff]   ;;  %v1173_v13 = vld [vmem:[%s1578_s1 + $0x38] sm:$0xff]  }
  0x5d   : > { %s1508_s18 = scalar_lea.vmem %s1577_s0, %s965_s25  ;;  %v1180_v14 = vld [vmem:[#allocation2 + $0x28] sm:$0xff]   ;;  %v1181_v16 = vld [vmem:[#allocation2 + $0x30] sm:$0xff]   ;;  %v1182_v17 = vld [vmem:[#allocation2 + $0x38] sm:$0xff]  }
  0x5e   : > { %v1174_v15 = vld [vmem:[%s1508_s18] sm:$0xff]   ;;  %v1184_v19 = vld [vmem:[#allocation4 + $0x8] sm:$0xff]   ;;  %v1185_v20 = vld [vmem:[#allocation4 + $0x10] sm:$0xff]   ;;  %s967_s18 = sshll.u32 %s1597_s17, 3 }
  0x5f   : > { %1046 = vmatpush3.bf16.msra.mxu0 %v1167_v2  ;;  %1066 = vmatpush3.bf16.msra.mxu1 %v1176_v6  ;;  %v1183_v18 = vld [vmem:[#allocation4] sm:$0xff]   ;;  %v1186_v21 = vld [vmem:[#allocation4 + $0x18] sm:$0xff]   ;;  %v1188_v23 = vld [vmem:[#allocation4 + $0x28] sm:$0xff]   ;;  %s378_s22 = scalar_lea.vmem %s1586_s9, %s967_s18 }
  0x60   : > { %1047 = vmatprep.subr.bf16.mxu0 %v1312_v0  ;;  %1067 = vmatprep.subr.bf16.mxu1 %v1312_v0  ;;  %v1187_v22 = vld [vmem:[#allocation4 + $0x20] sm:$0xff]   ;;  %v1189_v34 = vld [vmem:[#allocation4 + $0x30] sm:$0xff]   ;;  %v1190_v35 = vld [vmem:[#allocation4 + $0x38] sm:$0xff]  }
  0x61   : > { %v968_v24 = vld [vmem:[%s1579_s2] ss:$0 sm:$0xff]  ;;  %v1192_v37 = vld [vmem:[#allocation6 + $0x8] sm:$0xff]   ;;  %v1193_v38 = vld [vmem:[#allocation6 + $0x10] sm:$0xff]  }
  0x62   : > { %v1191_v36 = vld [vmem:[#allocation6] sm:$0xff]   ;;  %v1194_v39 = vld [vmem:[#allocation6 + $0x18] sm:$0xff]   ;;  %v1196_v41 = vld [vmem:[#allocation6 + $0x28] sm:$0xff]  }
  0x63   : > { %1048 = vmatpush3.bf16.msra.mxu0 %v1168_v3  ;;  %1068 = vmatpush3.bf16.msra.mxu1 %v1177_v8  ;;  %v1195_v40 = vld [vmem:[#allocation6 + $0x20] sm:$0xff]   ;;  %v1197_v52 = vld [vmem:[#allocation6 + $0x30] sm:$0xff]   ;;  %v1198_v53 = vld [vmem:[#allocation6 + $0x38] sm:$0xff]  }
  0x64   : > { %1049 = vmatprep.subr.bf16.mxu0 %v1312_v0  ;;  %1069 = vmatprep.subr.bf16.mxu1 %v1312_v0  ;;  %v978_v42 = vld [vmem:[%s1581_s4] ss:$0 sm:$0xff] }
  0x65   : > { %v987_v54 = vld [vmem:[%s1583_s6] ss:$0 sm:$0xff] }
  0x67   : > { %1050 = vmatpush3.bf16.msra.mxu0 %v1169_v5  ;;  %1070 = vmatpush3.bf16.msra.mxu1 %v1178_v10 }
  0x68   : > { %1051 = vmatprep.subr.bf16.mxu0 %v1312_v0  ;;  %1071 = vmatprep.subr.bf16.mxu1 %v1312_v0 }
  0x6b   : > { %1052 = vmatpush3.bf16.msra.mxu0 %v1170_v7  ;;  %1072 = vmatpush3.bf16.msra.mxu1 %v1179_v12 }
  0x6c   : > { %1053 = vmatprep.subr.bf16.mxu0 %v1312_v0  ;;  %1073 = vmatprep.subr.bf16.mxu1 %v1312_v0 }
  0x6f   : > { %1054 = vmatpush3.bf16.msra.mxu0 %v1171_v9  ;;  %1074 = vmatpush3.bf16.msra.mxu1 %v1180_v14 }
  0x70   : > { %1055 = vmatprep.subr.bf16.mxu0 %v1312_v0  ;;  %1075 = vmatprep.subr.bf16.mxu1 %v1312_v0 }
  0x73   : > { %1056 = vmatpush3.bf16.msra.mxu0 %v1172_v11  ;;  %1076 = vmatpush3.bf16.msra.mxu1 %v1181_v16 }
  0x74   : > { %1057 = vmatprep.subr.bf16.mxu0 %v1312_v0  ;;  %1077 = vmatprep.subr.bf16.mxu1 %v1312_v0 }
  0x77   : > { %1058 = vmatpush3.bf16.msra.mxu0 %v1173_v13  ;;  %1078 = vmatpush3.bf16.msra.mxu1 %v1182_v17 }
  0x78   : > { %1083 = vmatprep.subr.bf16.mxu0 %v1312_v0  ;;  %1103 = vmatprep.subr.bf16.mxu1 %v1312_v0 }
  0x7a   : > { %1060 = vmatmul.mubr.bf16.vlgmr.msra.gmra.mrb[0].mxu0 %v1174_v15 }
  0x7b   : > { %1099 = vmatprep.mubr.msk.bf16.mxu0 %vm1313_vm0, %v1312_v0  ;;  %1084 = vmatpush3.bf16.msra.mxu0 %v1183_v18 }
  0x7c   : > { %1085 = vmatprep.subr.bf16.mxu0 %v1312_v0 }
  0x7f   : > { %1086 = vmatpush3.bf16.msra.mxu0 %v1184_v19 }
  0x80   : > { %1087 = vmatprep.subr.bf16.mxu0 %v1312_v0 }
  0x83   : > { %1088 = vmatpush3.bf16.msra.mxu0 %v1185_v20 }
  0x84   : > { %1089 = vmatprep.subr.bf16.mxu0 %v1312_v0 }
  0x87   : > { %1090 = vmatpush3.bf16.msra.mxu0 %v1186_v21 }
  0x88   : > { %1091 = vmatprep.subr.bf16.mxu0 %v1312_v0 }
  0x8b   : > { %1092 = vmatpush3.bf16.msra.mxu0 %v1187_v22 }
  0x8c   : > { %1093 = vmatprep.subr.bf16.mxu0 %v1312_v0 }
  0x8f   : > { %1094 = vmatpush3.bf16.msra.mxu0 %v1188_v23 }
  0x90   : > { %1095 = vmatprep.subr.bf16.mxu0 %v1312_v0 }
  0x93   : > { %1096 = vmatpush3.bf16.msra.mxu0 %v1189_v34 }
  0x94   : > { %1097 = vmatprep.subr.bf16.mxu0 %v1312_v0 }
  0x97   : > { %1098 = vmatpush3.bf16.msra.mxu0 %v1190_v35 }
 0x14d   : > { %v494_v25 = vpop.f32.mrb[0].mxu0 }
 0x14e   : > { %v495_v26 = vadd.f32 %v968_v24, %v494_v25  ;;  %v1061_v27 = vpop.f32.mrb[1].mxu0 }
 0x14f   : > { %v497_v28 = vpop.f32.mrb[2].mxu0 }
 0x150   : > { %v498_v29 = vadd.f32 %v968_v24, %v497_v28  ;;  %v1062_v30 = vpop.f32.mrb[3].mxu0  ;;  %v501_v31 = vmax.f32 %v495_v26, 0.0 }
 0x152   : > { %v502_v32 = vmax.f32 %v498_v29, 0.0 }
 0x154   : > { %v503_v33 = vpack.c.bf16 %v502_v32, %v501_v31 }
 0x156   : > { %1080 = vmatmul.mubr.bf16.vlgmr.msra.gmra.mrb[0].mxu1 %v503_v33 }
 0x157   : > { %1119 = vmatprep.mubr.msk.bf16.mxu1 %vm1313_vm0, %v1312_v0  ;;  %1104 = vmatpush3.bf16.msra.mxu1 %v1191_v36 }
 0x158   : > { %1105 = vmatprep.subr.bf16.mxu1 %v1312_v0 }
 0x15b   : > { %1106 = vmatpush3.bf16.msra.mxu1 %v1192_v37 }
 0x15c   : > { %1107 = vmatprep.subr.bf16.mxu1 %v1312_v0 }
 0x15f   : > { %1108 = vmatpush3.bf16.msra.mxu1 %v1193_v38 }
 0x160   : > { %1109 = vmatprep.subr.bf16.mxu1 %v1312_v0 }
 0x163   : > { %1110 = vmatpush3.bf16.msra.mxu1 %v1194_v39 }
 0x164   : > { %1111 = vmatprep.subr.bf16.mxu1 %v1312_v0 }
 0x167   : > { %1112 = vmatpush3.bf16.msra.mxu1 %v1195_v40 }
 0x168   : > { %1113 = vmatprep.subr.bf16.mxu1 %v1312_v0 }
 0x16b   : > { %1114 = vmatpush3.bf16.msra.mxu1 %v1196_v41 }
 0x16c   : > { %1115 = vmatprep.subr.bf16.mxu1 %v1312_v0 }
 0x16f   : > { %1116 = vmatpush3.bf16.msra.mxu1 %v1197_v52 }
 0x170   : > { %1117 = vmatprep.subr.bf16.mxu1 %v1312_v0  ;;  %v996_v0 = vld [vmem:[%s1585_s8] ss:$0 sm:$0xff] }
 0x173   : > { %1118 = vmatpush3.bf16.msra.mxu1 %v1198_v53 }
 0x229   : > { %v609_v43 = vpop.f32.mrb[0].mxu1 }
 0x22a   : > { %v610_v44 = vadd.f32 %v978_v42, %v609_v43  ;;  %v1081_v45 = vpop.f32.mrb[1].mxu1 }
 0x22b   : > { %v612_v46 = vpop.f32.mrb[2].mxu1 }
 0x22c   : > { %v613_v47 = vadd.f32 %v978_v42, %v612_v46  ;;  %v1082_v48 = vpop.f32.mrb[3].mxu1  ;;  %v616_v49 = vmax.f32 %v610_v44, 0.0 }
 0x22e   : > { %v617_v50 = vmax.f32 %v613_v47, 0.0 }
 0x230   : > { %v618_v51 = vpack.c.bf16 %v617_v50, %v616_v49 }
 0x232   : > { %1100 = vmatmul.mubr.bf16.vlgmr.msra.gmra.mrb[4].mxu0 %v618_v51 }
 0x305   : > { %v724_v55 = vpop.f32.mrb[4].mxu0 }
 0x306   : > { %v725_v56 = vadd.f32 %v987_v54, %v724_v55  ;;  %v1101_v57 = vpop.f32.mrb[5].mxu0 }
 0x307   : > { %v727_v58 = vpop.f32.mrb[6].mxu0 }
 0x308   : > { %v728_v59 = vadd.f32 %v987_v54, %v727_v58  ;;  %v1102_v60 = vpop.f32.mrb[7].mxu0  ;;  %v731_v61 = vmax.f32 %v725_v56, 0.0 }
 0x30a   : > { %v732_v62 = vmax.f32 %v728_v59, 0.0 }
 0x30c   : > { %v733_v63 = vpack.c.bf16 %v732_v62, %v731_v61 }
 0x30e   : > { %1120 = vmatmul.mubr.bf16.vlgmr.msra.gmra.mrb[4].mxu1 %v733_v63 }
 0x3e1   : > { %v839_v1 = vpop.f32.mrb[4].mxu1 }
 0x3e2   : > { %v840_v2 = vadd.f32 %v996_v0, %v839_v1  ;;  %v1121_v3 = vpop.f32.mrb[5].mxu1 }
 0x3e3   : > { %v842_v4 = vpop.f32.mrb[6].mxu1 }
 0x3e4   : > { %846 = vmax.xlane.f32.xlu0 %v840_v2  ;;  %v1122_v5 = vpop.f32.mrb[7].mxu1  ;;  %v843_v6 = vadd.f32 %v996_v0, %v842_v4 }
 0x3e8   : > { %848 = vmax.xlane.f32.xlu0 %v843_v6 }
 0x471   : > { %v847_v7 = vpop.xlane.xlu0 %846 }
 0x472   : > { %v850_v8 = vsub.f32 %v840_v2, %v847_v7 }
 0x474   : > { %v852_v9 = vmul.f32 1.442695, %v850_v8 }
 0x475   : > { %v849_v10 = vpop.xlane.xlu0 %848 }
 0x476   : > { %1199 = vpow2.f32 %v852_v9  ;;  %v851_v11 = vsub.f32 %v843_v6, %v849_v10 }
 0x478   : > { %v854_v12 = vmul.f32 1.442695, %v851_v11 }
 0x47a   : > { %1201 = vpow2.f32 %v854_v12 }
 0x480   : > { %v1200_v13 = vpop.eup %1199 }
 0x481   : > { %856 = vadd.xlane.f32.xlu1 %v1200_v13 }
 0x484   : > { %v1202_v14 = vpop.eup %1201 }
 0x485   : > { %858 = vadd.xlane.f32.xlu1 %v1202_v14 }
 0x50e   : > { %v857_v15 = vpop.xlane.xlu1 %856 }
 0x50f   : > { %1203 = vrcp.f32 %v857_v15 }
 0x512   : > { %v859_v16 = vpop.xlane.xlu1 %858 }
 0x513   : > { %1205 = vrcp.f32 %v859_v16 }
 0x519   : > { %v1204_v17 = vpop.eup %1203 }
 0x51a   : > { %v861_v18 = vmul.f32 %v1204_v17, %v1200_v13 }
 0x51c   : > { %864 = vst [vmem:[%s378_s22] sm:$0xff] %v861_v18 }
 0x51d   : > { %v1206_v19 = vpop.eup %1205 }
 0x51e   : > { %v863_v20 = vmul.f32 %v1206_v19, %v1202_v14 }
 0x520   : > { %865 = vst [vmem:[%s378_s22 + $0x8] sm:$0xff] %v863_v20 }
 0x521 PF: > { %s21_s30 = sadd.s32 1, %s1305_s30  }
 0x522   : > { %p18_p3 = scmp.ge.s32.totalorder %s21_s30, 4  }
 0x524   :  { %20 = sbr.rel (!%p18_p3) target bundleno = 2 (0x2), region = 99 }
 0x52b   :  { %888 = vsyncpa [#allocation3], 1 }
 0x52c   :  { %890 = vsyncpa [#allocation3 + $0x1], 1 }
 0x52d   :  { %891 = vsyncpa [#allocation5], 1 }

</bundles_post_ra>
